<compile_context>
chip_gen: v7x
topology: tpu7x:2x2x1
jax: 0.10.0
libtpu: 0.0.40
codegen_flags: <defaults>
</compile_context>

<pallas_src>
import functools

import jax
import jax.numpy as jnp
from jax import lax
from jax.experimental import pallas as pl
from jax.experimental.pallas import tpu as pltpu

BN_EPS = 1e-5


def _ternarize(w):
    """TernaryQuantize applied to (w - mean(w)), exactly as in the PyTorch module."""
    wm = w - jnp.mean(w)
    mx = jnp.max(wm)
    mn = jnp.min(wm)
    lower = mn + (mx - mn) / 3.0
    higher = mx - (mx - mn) / 3.0
    out = jnp.where(wm < lower, jnp.float32(-1.0), wm)
    out = jnp.where(wm > higher, jnp.float32(1.0), out)
    out = jnp.where((wm >= lower) & (wm <= higher), jnp.float32(0.0), out)
    return out


def _toeplitz_weights(w_oihw, W):
    """Ternarize + fold noised_forward center tap + build the K-stacked Toeplitz weight.

    Returns (3*W*Ci, W*Co) bf16.  Rows [0:WC] are the kh=0 tap (input row h-1),
    [WC:2WC] the kh=1 tap, [2WC:3WC] the kh=2 tap.  The kw taps and the zero padding
    along W are encoded in the band structure, so each 3x3 conv is a single bf16
    lane-dense matmul with K = 3*W*Ci.
    """
    tw = _ternarize(w_oihw.astype(jnp.float32))              # (Co,Ci,3,3), values in {-1,0,1}
    tw = tw.at[:, :, 1, 1].multiply(2.0)                      # noised_forward == extra center-tap conv
    w_hwio = jnp.transpose(tw, (2, 3, 1, 0))                  # (3,3,Ci,Co)
    ci, co = w_hwio.shape[2], w_hwio.shape[3]
    # ind[dw, src_w, dst_w] = 1 iff src_w == dst_w + dw - 1 (missing entries = W zero-pad)
    ind = jnp.stack([jnp.eye(W, W, k=1 - dw, dtype=jnp.float32) for dw in range(3)])
    toe = jnp.einsum("wsd,hwio->hsido", ind, w_hwio)           # (3, W, Ci, W, Co)
    return toe.reshape(3 * W * ci, W * co).astype(jnp.bfloat16)


def basic_block_kernel(x_ref, toe1_ref, toe2_ref, gb_ref, out_ref, *, H, C, inv_count):
    """Fused BasicBlock: 2x (ternary 3x3 conv + center-tap fold) + 2x train-mode BN + relus."""
    x = x_ref[...]                                   # (BH, WC) f32
    gb = gb_ref[...]                                 # (4, WC)  f32
    BH, WC = x.shape

    # row masks for the kh = +/-1 halo (batch boundaries included, since row = b*H + h)
    row = lax.broadcasted_iota(jnp.int32, (BH, WC), 0)
    h = lax.rem(row, jnp.int32(H))
    top = h == 0
    bot = h == (H - 1)

    def conv(a, toe_ref):                            # a: (BH, WC) f32 -> (BH, WC) f32
        a_prev = jnp.where(top, 0.0, pltpu.roll(a, shift=1, axis=0))        # row h-1
        a_next = jnp.where(bot, 0.0, pltpu.roll(a, shift=BH - 1, axis=0))   # row h+1
        xk = jnp.concatenate([a_prev, a, a_next], axis=1).astype(jnp.bfloat16)  # (BH, 3*WC)
        return jnp.dot(xk, toe_ref[...], preferred_element_type=jnp.float32)

    def group_sum(s):                                # (1, WC): sum over the W groups, bcast back
        k = C
        while k < WC:                                # log2(W) lane rolls (XLU), W power of 2
            s = s + pltpu.roll(s, shift=k, axis=1)
            k *= 2
        return s

    def bn(y, gamma, beta):                          # training-mode BN, two-pass stats, all f32
        mean = group_sum(jnp.sum(y, axis=0, keepdims=True)) * inv_count      # (1, WC)
        d = y - mean
        var = group_sum(jnp.sum(d * d, axis=0, keepdims=True)) * inv_count   # biased var
        return d * (lax.rsqrt(var + BN_EPS) * gamma) + beta

    out1 = jnp.maximum(bn(conv(x, toe1_ref), gb[0:1, :], gb[1:2, :]), 0.0)
    out2 = bn(conv(out1, toe2_ref), gb[2:3, :], gb[3:4, :])
    out_ref[...] = jnp.maximum(out1 + out2, 0.0).astype(out_ref.dtype)


def basic_block_forward(x_nchw, w1_oihw, g1, b1, w2_oihw, g2, b2):
    """Wrapper: NCHW in / NCHW out, parameters in PyTorch layouts (OIHW conv weights)."""
    B, C, H, W = x_nchw.shape
    BH, WC = B * H, W * C
    assert WC % 128 == 0 and BH % 8 == 0, "lane-dense layout needs W*C % 128 == 0, B*H % 8 == 0"
    assert W & (W - 1) == 0, "BN roll-accumulate reduce assumes W is a power of two"
    # TODO(synk): general (non power-of-two) W needs a masked roll-accumulate or a tiny bf16
    # channel-group matmul for the BN reduce.

    # lane-dense (B*H, W*C) activation layout; f32 in, bf16 only at the MXU operands
    x2d = jnp.transpose(x_nchw, (0, 2, 3, 1)).reshape(BH, WC).astype(jnp.float32)

    # all weight prep (ternarize, center-tap fold, K-stacked Toeplitz) hoisted out of the kernel
    toe1 = _toeplitz_weights(w1_oihw, W)
    toe2 = _toeplitz_weights(w2_oihw, W)
    gb = jnp.stack([jnp.tile(g1.astype(jnp.float32), W),
                    jnp.tile(b1.astype(jnp.float32), W),
                    jnp.tile(g2.astype(jnp.float32), W),
                    jnp.tile(b2.astype(jnp.float32), W)])               # (4, WC)

    flops = int(2 * (2 * BH * (3 * WC) * WC))                           # two K-packed conv matmuls
    bytes_accessed = int(BH * WC * 4                                     # x
                         + 2 * (3 * WC) * WC * 2                         # toe1 + toe2 (bf16)
                         + 4 * WC * 4                                    # gb
                         + BH * WC * 4)                                  # out

    kernel = pl.pallas_call(
        functools.partial(basic_block_kernel, H=H, C=C, inv_count=1.0 / float(B * H * W)),
        out_shape=jax.ShapeDtypeStruct((BH, WC), jnp.float32),
        grid_spec=pltpu.PrefetchScalarGridSpec(
            num_scalar_prefetch=0,
            grid=(1,),
            in_specs=[
                pl.BlockSpec((BH, WC), lambda i: (0, 0)),
                pl.BlockSpec((3 * WC, WC), lambda i: (0, 0)),
                pl.BlockSpec((3 * WC, WC), lambda i: (0, 0)),
                pl.BlockSpec((4, WC), lambda i: (0, 0)),
            ],
            out_specs=pl.BlockSpec((BH, WC), lambda i: (0, 0)),
        ),
        compiler_params=pltpu.CompilerParams(
            dimension_semantics=("arbitrary",),
            vmem_limit_bytes=32 * 1024 * 1024),
        cost_estimate=pl.CostEstimate(flops=flops, transcendentals=2 * WC,
                                      bytes_accessed=bytes_accessed),
    )
    out2d = kernel(x2d, toe1, toe2, gb)
    return jnp.transpose(out2d.reshape(B, H, W, C), (0, 3, 1, 2))        # -> NCHW


# ---------- pure-JAX reference (for correctness check) ----------
def _ref_forward(x_nchw, w1_oihw, g1, b1, w2_oihw, g2, b2):
    x = jnp.transpose(x_nchw, (0, 2, 3, 1))

    def conv_nt(a, w_oihw):
        tw = _ternarize(w_oihw.astype(jnp.float32))
        w_hwio = jnp.transpose(tw, (2, 3, 1, 0))
        y = lax.conv_general_dilated(
            a, w_hwio, window_strides=(1, 1), padding=((1, 1), (1, 1)),
            dimension_numbers=("NHWC", "HWIO", "NHWC"))
        y = y + jnp.einsum("bhwi,io->bhwo", a, w_hwio[1, 1])
        return y

    def bn(y, g, b):
        m = jnp.mean(y, axis=(0, 1, 2))
        v = jnp.mean((y - m) ** 2, axis=(0, 1, 2))
        return (y - m) * lax.rsqrt(v + BN_EPS) * g + b

    out1 = jax.nn.relu(bn(conv_nt(x, w1_oihw), g1, b1))
    out2 = bn(conv_nt(out1, w2_oihw), g2, b2)
    out = jax.nn.relu(out1 + out2)
    return jnp.transpose(out, (0, 3, 1, 2))


if __name__ == "__main__":
    B, C, H, W = 2, 8, 16, 16
    key = jax.random.PRNGKey(0)
    kx, kw1, kw2 = jax.random.split(key, 3)

    x = jax.random.normal(kx, (B, C, H, W), jnp.float32)
    # conv weights in PyTorch OIHW layout (out_c, in_c, kh, kw)
    w1 = jax.random.normal(kw1, (C, C, 3, 3), jnp.float32) * 0.1
    w2 = jax.random.normal(kw2, (C, C, 3, 3), jnp.float32) * 0.1
    # BatchNorm2d default init: weight=1, bias=0
    g1 = jnp.ones((C,), jnp.float32)
    b1 = jnp.zeros((C,), jnp.float32)
    g2 = jnp.ones((C,), jnp.float32)
    b2 = jnp.zeros((C,), jnp.float32)

    out = basic_block_forward(x, w1, g1, b1, w2, g2, b2)
    out = jax.block_until_ready(out)

    ref = _ref_forward(x, w1, g1, b1, w2, g2, b2)
    assert out.shape == (B, C, H, W), out.shape
    max_err = float(jnp.max(jnp.abs(out - ref)))
    # NOTE: activations are rounded to bf16 only for the MXU conv operands (weights are
    # exact in bf16); BN / residual / relu math is f32, hence the loose-ish tolerance.
    assert jnp.allclose(out, ref, atol=2e-2, rtol=2e-2), f"max abs err = {max_err}"

    print("KERNEL_OK")
</pallas_src>

<mosaic_0001>
module attributes {stable_mosaic.version = 11 : i64} {
  func.func @basic_block_kernel(%arg0: i32, %arg1: memref<32x128xf32, #tpu.memory_space<vmem>>, %arg2: memref<384x128xbf16, #tpu.memory_space<vmem>>, %arg3: memref<384x128xbf16, #tpu.memory_space<vmem>>, %arg4: memref<4x128xf32, #tpu.memory_space<vmem>>, %arg5: memref<32x128xf32, #tpu.memory_space<vmem>>) attributes {dimension_semantics = [#tpu.dimension_semantics<arbitrary>], iteration_bounds = array<i64: 1>, scalar_prefetch = 0 : i64, scratch_operands = 0 : i64, tpu.core_type = #tpu.core_type<tc>, window_params = [{pipeline_mode = #tpu.pipeline_mode<synchronous>, transform_indices = @transform_0, window_bounds = array<i64: 32, 128>}, {pipeline_mode = #tpu.pipeline_mode<synchronous>, transform_indices = @transform_1, window_bounds = array<i64: 384, 128>}, {pipeline_mode = #tpu.pipeline_mode<synchronous>, transform_indices = @transform_2, window_bounds = array<i64: 384, 128>}, {pipeline_mode = #tpu.pipeline_mode<synchronous>, transform_indices = @transform_3, window_bounds = array<i64: 4, 128>}, {pipeline_mode = #tpu.pipeline_mode<synchronous>, transform_indices = @transform_4, window_bounds = array<i64: 32, 128>}]} {
    %c0 = arith.constant 0 : index
    %c0_0 = arith.constant 0 : index
    %0 = vector.load %arg1[%c0, %c0_0] : memref<32x128xf32, #tpu.memory_space<vmem>>, vector<32x128xf32>
    %c0_1 = arith.constant 0 : index
    %c0_2 = arith.constant 0 : index
    %1 = vector.load %arg4[%c0_1, %c0_2] : memref<4x128xf32, #tpu.memory_space<vmem>>, vector<4x128xf32>
    %2 = tpu.iota {dimensions = array<i32: 0>} : vector<32x128xi32>
    %c16_i32 = arith.constant 16 : i32
    %3 = vector.broadcast %c16_i32 : i32 to vector<32x128xi32>
    %4 = arith.remsi %2, %3 : vector<32x128xi32>
    %c0_i32 = arith.constant 0 : i32
    %5 = vector.broadcast %c0_i32 : i32 to vector<32x128xi32>
    %6 = arith.cmpi eq, %4, %5 : vector<32x128xi32>
    %c15_i32 = arith.constant 15 : i32
    %7 = vector.broadcast %c15_i32 : i32 to vector<32x128xi32>
    %8 = arith.cmpi eq, %4, %7 : vector<32x128xi32>
    %c1_i32 = arith.constant 1 : i32
    %9 = tpu.dynamic_rotate %0 by %c1_i32 dim 0 : vector<32x128xf32>, i32 -> vector<32x128xf32>
    %cst = arith.constant 0.000000e+00 : f32
    %10 = vector.broadcast %cst : f32 to vector<32x128xf32>
    %11 = arith.select %6, %10, %9 : vector<32x128xi1>, vector<32x128xf32>
    %c31_i32 = arith.constant 31 : i32
    %12 = tpu.dynamic_rotate %0 by %c31_i32 dim 0 : vector<32x128xf32>, i32 -> vector<32x128xf32>
    %cst_3 = arith.constant 0.000000e+00 : f32
    %13 = vector.broadcast %cst_3 : f32 to vector<32x128xf32>
    %14 = arith.select %8, %13, %12 : vector<32x128xi1>, vector<32x128xf32>
    %15 = tpu.concatenate %11, %0, %14 in 1 : vector<32x128xf32>, vector<32x128xf32>, vector<32x128xf32> -> vector<32x384xf32>
    %16 = arith.truncf %15 : vector<32x384xf32> to vector<32x384xbf16>
    %c0_4 = arith.constant 0 : index
    %c0_5 = arith.constant 0 : index
    %17 = vector.load %arg2[%c0_4, %c0_5] : memref<384x128xbf16, #tpu.memory_space<vmem>>, vector<384x128xbf16>
    %cst_6 = arith.constant dense<0.000000e+00> : vector<32x128xf32>
    %18 = tpu.matmul %16, %17, %cst_6 {dimension_numbers = #tpu.dot_dimension_numbers<[1], [0], [0], [1], [0, 0, 1, 1], [], []>} : vector<32x384xbf16>, vector<384x128xbf16>, vector<32x128xf32> -> vector<32x128xf32>
    %19 = vector.extract_strided_slice %1 {offsets = [0, 0], sizes = [1, 128], strides = [1, 1]} : vector<4x128xf32> to vector<1x128xf32>
    %20 = vector.extract_strided_slice %1 {offsets = [1, 0], sizes = [1, 128], strides = [1, 1]} : vector<4x128xf32> to vector<1x128xf32>
    %cst_7 = arith.constant dense<0.000000e+00> : vector<128xf32>
    %21 = vector.multi_reduction <add>, %18, %cst_7 [0] : vector<32x128xf32> to vector<128xf32>
    %22 = vector.shape_cast %21 : vector<128xf32> to vector<1x128xf32>
    %c8_i32 = arith.constant 8 : i32
    %23 = tpu.dynamic_rotate %22 by %c8_i32 dim 1 : vector<1x128xf32>, i32 -> vector<1x128xf32>
    %24 = arith.addf %22, %23 : vector<1x128xf32>
    %c16_i32_8 = arith.constant 16 : i32
    %25 = tpu.dynamic_rotate %24 by %c16_i32_8 dim 1 : vector<1x128xf32>, i32 -> vector<1x128xf32>
    %26 = arith.addf %24, %25 : vector<1x128xf32>
    %c32_i32 = arith.constant 32 : i32
    %27 = tpu.dynamic_rotate %26 by %c32_i32 dim 1 : vector<1x128xf32>, i32 -> vector<1x128xf32>
    %28 = arith.addf %26, %27 : vector<1x128xf32>
    %c64_i32 = arith.constant 64 : i32
    %29 = tpu.dynamic_rotate %28 by %c64_i32 dim 1 : vector<1x128xf32>, i32 -> vector<1x128xf32>
    %30 = arith.addf %28, %29 : vector<1x128xf32>
    %cst_9 = arith.constant 0.001953125 : f32
    %31 = vector.broadcast %cst_9 : f32 to vector<1x128xf32>
    %32 = arith.mulf %30, %31 : vector<1x128xf32>
    %33 = vector.broadcast %32 : vector<1x128xf32> to vector<32x128xf32>
    %34 = arith.subf %18, %33 : vector<32x128xf32>
    %35 = arith.mulf %34, %34 : vector<32x128xf32>
    %cst_10 = arith.constant dense<0.000000e+00> : vector<128xf32>
    %36 = vector.multi_reduction <add>, %35, %cst_10 [0] : vector<32x128xf32> to vector<128xf32>
    %37 = vector.shape_cast %36 : vector<128xf32> to vector<1x128xf32>
    %c8_i32_11 = arith.constant 8 : i32
    %38 = tpu.dynamic_rotate %37 by %c8_i32_11 dim 1 : vector<1x128xf32>, i32 -> vector<1x128xf32>
    %39 = arith.addf %37, %38 : vector<1x128xf32>
    %c16_i32_12 = arith.constant 16 : i32
    %40 = tpu.dynamic_rotate %39 by %c16_i32_12 dim 1 : vector<1x128xf32>, i32 -> vector<1x128xf32>
    %41 = arith.addf %39, %40 : vector<1x128xf32>
    %c32_i32_13 = arith.constant 32 : i32
    %42 = tpu.dynamic_rotate %41 by %c32_i32_13 dim 1 : vector<1x128xf32>, i32 -> vector<1x128xf32>
    %43 = arith.addf %41, %42 : vector<1x128xf32>
    %c64_i32_14 = arith.constant 64 : i32
    %44 = tpu.dynamic_rotate %43 by %c64_i32_14 dim 1 : vector<1x128xf32>, i32 -> vector<1x128xf32>
    %45 = arith.addf %43, %44 : vector<1x128xf32>
    %cst_15 = arith.constant 0.001953125 : f32
    %46 = vector.broadcast %cst_15 : f32 to vector<1x128xf32>
    %47 = arith.mulf %45, %46 : vector<1x128xf32>
    %cst_16 = arith.constant 9.99999974E-6 : f32
    %48 = vector.broadcast %cst_16 : f32 to vector<1x128xf32>
    %49 = arith.addf %47, %48 : vector<1x128xf32>
    %50 = math.rsqrt %49 : vector<1x128xf32>
    %51 = arith.mulf %50, %19 : vector<1x128xf32>
    %52 = vector.broadcast %51 : vector<1x128xf32> to vector<32x128xf32>
    %53 = arith.mulf %34, %52 : vector<32x128xf32>
    %54 = vector.broadcast %20 : vector<1x128xf32> to vector<32x128xf32>
    %55 = arith.addf %53, %54 : vector<32x128xf32>
    %cst_17 = arith.constant 0.000000e+00 : f32
    %56 = vector.broadcast %cst_17 : f32 to vector<32x128xf32>
    %57 = arith.maximumf %55, %56 : vector<32x128xf32>
    %c1_i32_18 = arith.constant 1 : i32
    %58 = tpu.dynamic_rotate %57 by %c1_i32_18 dim 0 : vector<32x128xf32>, i32 -> vector<32x128xf32>
    %cst_19 = arith.constant 0.000000e+00 : f32
    %59 = vector.broadcast %cst_19 : f32 to vector<32x128xf32>
    %60 = arith.select %6, %59, %58 : vector<32x128xi1>, vector<32x128xf32>
    %c31_i32_20 = arith.constant 31 : i32
    %61 = tpu.dynamic_rotate %57 by %c31_i32_20 dim 0 : vector<32x128xf32>, i32 -> vector<32x128xf32>
    %cst_21 = arith.constant 0.000000e+00 : f32
    %62 = vector.broadcast %cst_21 : f32 to vector<32x128xf32>
    %63 = arith.select %8, %62, %61 : vector<32x128xi1>, vector<32x128xf32>
    %64 = tpu.concatenate %60, %57, %63 in 1 : vector<32x128xf32>, vector<32x128xf32>, vector<32x128xf32> -> vector<32x384xf32>
    %65 = arith.truncf %64 : vector<32x384xf32> to vector<32x384xbf16>
    %c0_22 = arith.constant 0 : index
    %c0_23 = arith.constant 0 : index
    %66 = vector.load %arg3[%c0_22, %c0_23] : memref<384x128xbf16, #tpu.memory_space<vmem>>, vector<384x128xbf16>
    %cst_24 = arith.constant dense<0.000000e+00> : vector<32x128xf32>
    %67 = tpu.matmul %65, %66, %cst_24 {dimension_numbers = #tpu.dot_dimension_numbers<[1], [0], [0], [1], [0, 0, 1, 1], [], []>} : vector<32x384xbf16>, vector<384x128xbf16>, vector<32x128xf32> -> vector<32x128xf32>
    %68 = vector.extract_strided_slice %1 {offsets = [2, 0], sizes = [1, 128], strides = [1, 1]} : vector<4x128xf32> to vector<1x128xf32>
    %69 = vector.extract_strided_slice %1 {offsets = [3, 0], sizes = [1, 128], strides = [1, 1]} : vector<4x128xf32> to vector<1x128xf32>
    %cst_25 = arith.constant dense<0.000000e+00> : vector<128xf32>
    %70 = vector.multi_reduction <add>, %67, %cst_25 [0] : vector<32x128xf32> to vector<128xf32>
    %71 = vector.shape_cast %70 : vector<128xf32> to vector<1x128xf32>
    %c8_i32_26 = arith.constant 8 : i32
    %72 = tpu.dynamic_rotate %71 by %c8_i32_26 dim 1 : vector<1x128xf32>, i32 -> vector<1x128xf32>
    %73 = arith.addf %71, %72 : vector<1x128xf32>
    %c16_i32_27 = arith.constant 16 : i32
    %74 = tpu.dynamic_rotate %73 by %c16_i32_27 dim 1 : vector<1x128xf32>, i32 -> vector<1x128xf32>
    %75 = arith.addf %73, %74 : vector<1x128xf32>
    %c32_i32_28 = arith.constant 32 : i32
    %76 = tpu.dynamic_rotate %75 by %c32_i32_28 dim 1 : vector<1x128xf32>, i32 -> vector<1x128xf32>
    %77 = arith.addf %75, %76 : vector<1x128xf32>
    %c64_i32_29 = arith.constant 64 : i32
    %78 = tpu.dynamic_rotate %77 by %c64_i32_29 dim 1 : vector<1x128xf32>, i32 -> vector<1x128xf32>
    %79 = arith.addf %77, %78 : vector<1x128xf32>
    %cst_30 = arith.constant 0.001953125 : f32
    %80 = vector.broadcast %cst_30 : f32 to vector<1x128xf32>
    %81 = arith.mulf %79, %80 : vector<1x128xf32>
    %82 = vector.broadcast %81 : vector<1x128xf32> to vector<32x128xf32>
    %83 = arith.subf %67, %82 : vector<32x128xf32>
    %84 = arith.mulf %83, %83 : vector<32x128xf32>
    %cst_31 = arith.constant dense<0.000000e+00> : vector<128xf32>
    %85 = vector.multi_reduction <add>, %84, %cst_31 [0] : vector<32x128xf32> to vector<128xf32>
    %86 = vector.shape_cast %85 : vector<128xf32> to vector<1x128xf32>
    %c8_i32_32 = arith.constant 8 : i32
    %87 = tpu.dynamic_rotate %86 by %c8_i32_32 dim 1 : vector<1x128xf32>, i32 -> vector<1x128xf32>
    %88 = arith.addf %86, %87 : vector<1x128xf32>
    %c16_i32_33 = arith.constant 16 : i32
    %89 = tpu.dynamic_rotate %88 by %c16_i32_33 dim 1 : vector<1x128xf32>, i32 -> vector<1x128xf32>
    %90 = arith.addf %88, %89 : vector<1x128xf32>
    %c32_i32_34 = arith.constant 32 : i32
    %91 = tpu.dynamic_rotate %90 by %c32_i32_34 dim 1 : vector<1x128xf32>, i32 -> vector<1x128xf32>
    %92 = arith.addf %90, %91 : vector<1x128xf32>
    %c64_i32_35 = arith.constant 64 : i32
    %93 = tpu.dynamic_rotate %92 by %c64_i32_35 dim 1 : vector<1x128xf32>, i32 -> vector<1x128xf32>
    %94 = arith.addf %92, %93 : vector<1x128xf32>
    %cst_36 = arith.constant 0.001953125 : f32
    %95 = vector.broadcast %cst_36 : f32 to vector<1x128xf32>
    %96 = arith.mulf %94, %95 : vector<1x128xf32>
    %cst_37 = arith.constant 9.99999974E-6 : f32
    %97 = vector.broadcast %cst_37 : f32 to vector<1x128xf32>
    %98 = arith.addf %96, %97 : vector<1x128xf32>
    %99 = math.rsqrt %98 : vector<1x128xf32>
    %100 = arith.mulf %99, %68 : vector<1x128xf32>
    %101 = vector.broadcast %100 : vector<1x128xf32> to vector<32x128xf32>
    %102 = arith.mulf %83, %101 : vector<32x128xf32>
    %103 = vector.broadcast %69 : vector<1x128xf32> to vector<32x128xf32>
    %104 = arith.addf %102, %103 : vector<32x128xf32>
    %105 = arith.addf %57, %104 : vector<32x128xf32>
    %cst_38 = arith.constant 0.000000e+00 : f32
    %106 = vector.broadcast %cst_38 : f32 to vector<32x128xf32>
    %107 = arith.maximumf %105, %106 : vector<32x128xf32>
    %c0_39 = arith.constant 0 : index
    %c0_40 = arith.constant 0 : index
    %108 = vector.load %arg5[%c0_39, %c0_40] : memref<32x128xf32, #tpu.memory_space<vmem>>, vector<32x128xf32>
    tpu.vector_store %arg5[%c0_39, %c0_40], %107 {strides = array<i32>} : memref<32x128xf32, #tpu.memory_space<vmem>>, vector<32x128xf32>,
    return
  }
  func.func @transform_0(%arg0: i32) -> (i32, i32) {
    %c0_i32 = arith.constant 0 : i32
    %c0_i32_0 = arith.constant 0 : i32
    %c0_i32_1 = arith.constant 0 : i32
    return %c0_i32, %c0_i32_0 : i32, i32
  }
  func.func @transform_1(%arg0: i32) -> (i32, i32) {
    %c0_i32 = arith.constant 0 : i32
    %c0_i32_0 = arith.constant 0 : i32
    %c0_i32_1 = arith.constant 0 : i32
    return %c0_i32, %c0_i32_0 : i32, i32
  }
  func.func @transform_2(%arg0: i32) -> (i32, i32) {
    %c0_i32 = arith.constant 0 : i32
    %c0_i32_0 = arith.constant 0 : i32
    %c0_i32_1 = arith.constant 0 : i32
    return %c0_i32, %c0_i32_0 : i32, i32
  }
  func.func @transform_3(%arg0: i32) -> (i32, i32) {
    %c0_i32 = arith.constant 0 : i32
    %c0_i32_0 = arith.constant 0 : i32
    %c0_i32_1 = arith.constant 0 : i32
    return %c0_i32, %c0_i32_0 : i32, i32
  }
  func.func @transform_4(%arg0: i32) -> (i32, i32) {
    %c0_i32 = arith.constant 0 : i32
    %c0_i32_0 = arith.constant 0 : i32
    %c0_i32_1 = arith.constant 0 : i32
    return %c0_i32, %c0_i32_0 : i32, i32
  }
}

</mosaic_0001>

<bundles_post_ra>
// kernel: tpu_custom_call.1
= control target key start
LH: loop header
LB: loop body
LE: loop exit
PB: predicated region body
PF: predicated region fallthrough
CT: control target
= control target key end

     0   :  { %9 = vsyncpa [#allocation3], 0  ;;  %s1560_s0 = inlined_call_operand.hbm [shape: f32[32,128], index: 0, kind: input, shape index: {}]   ;;  %s1561_s1 = inlined_call_operand.hbm [shape: bf16[384,128], index: 1, kind: input, shape index: {}]   ;;  %s1562_s2 = inlined_call_operand.hbm [shape: bf16[384,128], index: 2, kind: input, shape index: {}]   ;;  %s1563_s3 = inlined_call_operand.vmem [shape: f32[4,128], index: 3, kind: input, shape index: {}]   ;;  %s1564_s4 = inlined_call_operand.hbm [shape: f32[32,128], index: 4, kind: output, shape index: {}]  }
   0x1   :  { %10 = vsyncpa [#allocation6], 0 }
   0x2   :  { %11 = vsyncpa [#allocation4], 0  ;;  %s1292_s15 = smov [#allocation5]   ;;  %s1198_s19 = scalar_lea.hbm %s1561_s1, 3072 }
   0x3   :  { %s29_s16 = sshll.u32 %s1292_s15, 4  ;;  %p1199_p0 = scmp.ne.s32.totalorder %s1561_s1, %s1198_s19  ;;  %s30_s16 = int_to_ptr.vmem [resolvable:$true] %s29_s16 }
   0x4   :  { %p1202_p1 = scmp.lt.u32.totalorder %s1198_s19, %s1561_s1 }
   0x6   :  { %p1204_p2 = pnand %p1202_p1, %p1199_p0 }
   0x8   :  { %1207 = shalt.err (!%p1204_p2)
}
   0x9   :  { %s1208_s24 = scalar_lea.vmem %s30_s16, 3072  ;;  %p1213_p4 = scmp.lt.s32.totalorder %s30_s16, %s30_s16 }
   0xa   :  { %p1209_p3 = scmp.ne.s32.totalorder %s30_s16, %s1208_s24  ;;  %p1214_p5 = scmp.lt.s32.totalorder %s1208_s24, %s1208_s24 }
   0xc   :  { %p1215_p6 = por %p1214_p5, %p1213_p4 }
   0xe   :  { %p1216_p7 = pnand %p1215_p6, %p1209_p3 }
  0x10   :  { %1219 = shalt.err (!%p1216_p7)
}
  0x11   :  { %s1293_s25 = smov 64   ;;  %s1294_s26 = smov 4  }
  0x12   :  { %35 = dma.hbm_to_vmem [thread:$0]  %s1561_s1, 3072, %s30_s16, [#allocation6], %s1293_s25, %s1293_s25, %s1294_s26  }
  0x13   :  { %s1295_s29 = smov [#allocation2]   ;;  %s1220_s7 = scalar_lea.hbm %s1560_s0, 512 }
  0x14   :  { %s17_s30 = sshll.u32 %s1295_s29, 4  ;;  %p1221_p8 = scmp.ne.s32.totalorder %s1560_s0, %s1220_s7  ;;  %s18_s30 = int_to_ptr.vmem [resolvable:$true] %s17_s30 }
  0x15   :  { %p1224_p9 = scmp.lt.u32.totalorder %s1220_s7, %s1560_s0 }
  0x17   :  { %p1226_p10 = pnand %p1224_p9, %p1221_p8 }
  0x19   :  { %1229 = shalt.err (!%p1226_p10)
}
  0x1a   :  { %s1230_s12 = scalar_lea.vmem %s18_s30, 512  ;;  %p1235_p12 = scmp.lt.s32.totalorder %s18_s30, %s18_s30 }
  0x1b   :  { %p1231_p11 = scmp.ne.s32.totalorder %s18_s30, %s1230_s12  ;;  %p1236_p13 = scmp.lt.s32.totalorder %s1230_s12, %s1230_s12 }
  0x1d   :  { %p1237_p0 = por %p1236_p13, %p1235_p12 }
  0x1f   :  { %p1238_p1 = pnand %p1237_p0, %p1231_p11 }
  0x21   :  { %1241 = shalt.err (!%p1238_p1)
}
  0x22   :  { %s1296_s1 = smov 128   ;;  %s1297_s13 = smov 8  }
  0x23   :  { %23 = dma.hbm_to_vmem [thread:$0]  %s1560_s0, 512, %s18_s30, [#allocation3], %s1296_s1, %s1296_s1, %s1297_s13  }
  0x24   :  { %s1298_s16 = smov [#allocation7]   ;;  %s1242_s20 = scalar_lea.hbm %s1562_s2, 3072 }
  0x25   :  { %s41_s17 = sshll.u32 %s1298_s16, 4  ;;  %p1243_p2 = scmp.ne.s32.totalorder %s1562_s2, %s1242_s20  ;;  %s42_s17 = int_to_ptr.vmem [resolvable:$true] %s41_s17 }
  0x26   :  { %p1246_p3 = scmp.lt.u32.totalorder %s1242_s20, %s1562_s2 }
  0x28   :  { %p1248_p4 = pnand %p1246_p3, %p1243_p2 }
  0x2a   :  { %1251 = shalt.err (!%p1248_p4)
}
  0x2b   :  { %s1252_s27 = scalar_lea.vmem %s42_s17, 3072  ;;  %p1257_p6 = scmp.lt.s32.totalorder %s42_s17, %s42_s17 }
  0x2c   :  { %p1253_p5 = scmp.ne.s32.totalorder %s42_s17, %s1252_s27  ;;  %p1258_p7 = scmp.lt.s32.totalorder %s1252_s27, %s1252_s27 }
  0x2e   :  { %p1259_p8 = por %p1258_p7, %p1257_p6 }
  0x30   :  { %p1260_p9 = pnand %p1259_p8, %p1253_p5 }
  0x32   :  { %1263 = shalt.err (!%p1260_p9)
}
  0x33   :  { %47 = dma.hbm_to_vmem [thread:$0]  %s1562_s2, 3072, %s42_s17, [#allocation6], %s1293_s25, %s1293_s25, %s1294_s26  }
  0x34   :  { %1286 = dma.done.wait [#allocation3], 512  }
  0x35   :  { %1287 = vsyncadd [#allocation3], 4294966784 }
  0x36   :  { %1288 = dma.done.wait [#allocation6], 6144  }
  0x37   :  { %1289 = vsyncadd [#allocation6], 4294961152  ;;  %v1146_v0 = vld [vmem:[#allocation5 + $0x40] sm:$0xff]   ;;  %v1149_v3 = vld [vmem:[#allocation5 + $0x48] sm:$0xff]   ;;  %v65_v8 = vlaneseq  ;;  %vm1299_vm5 = vmmov 1   ;;  %s1300_s2 = smov 16  }
  0x38   :  { %v1147_v1 = vld [vmem:[#allocation5] sm:$0xff]   ;;  %1019 = vmatprep.subr.bf16.mxu0 %v1146_v0  ;;  %v1150_v4 = vld [vmem:[#allocation5 + $0x8] sm:$0xff]   ;;  %v1152_v6 = vld [vmem:[#allocation5 + $0x50] sm:$0xff]   ;;  %s1301_s26 = smov 32  }
  0x39   :  { %v1148_v2 = vld [vmem:[#allocation5 + $0x80] sm:$0xff]   ;;  %1020 = vmatpush3.bf16.msra.mxu0 %v1147_v1  ;;  %v1151_v5 = vld [vmem:[#allocation5 + $0x88] sm:$0xff]   ;;  %v1153_v7 = vld [vmem:[#allocation5 + $0x10] sm:$0xff]   ;;  %v1373_v13 = vshrl.u32 %v65_v8, 7 }
  0x3a   :  { %1095 = vmatprep.subr.bf16.mxu1 %v1148_v2  ;;  %1021 = vmatprep.subr.bf16.mxu0 %v1149_v3  ;;  %v1154_v9 = vld [vmem:[#allocation5 + $0x90] sm:$0xff]   ;;  %v1155_v10 = vld [vmem:[#allocation5 + $0x58] sm:$0xff]   ;;  %v1158_v14 = vld [vmem:[#allocation5 + $0x60] sm:$0xff]  }
  0x3b   :  { %1096 = vmatpush3.bf16.msra.mxu1 %v1148_v2  ;;  %v1156_v11 = vld [vmem:[#allocation5 + $0x18] sm:$0xff]   ;;  %v1160_v15 = vld [vmem:[#allocation5 + $0xa0] sm:$0xff]   ;;  %v67_v17 = vadd.s32 8, %v1373_v13  ;;  %v1161_v18 = vld [vmem:[#allocation5 + $0x68] sm:$0xff]   ;;  %v69_v19 = vadd.s32 24, %v1373_v13  ;;  %v74_v20 = vand.u32 15, %v1373_v13 }
  0x3c   :  { %1097 = vmatprep.subr.bf16.mxu1 %v1151_v5  ;;  %v1157_v12 = vld [vmem:[#allocation5 + $0x98] sm:$0xff]   ;;  %v1159_v16 = vld [vmem:[#allocation5 + $0x20] sm:$0xff]   ;;  %v1163_v21 = vld [vmem:[#allocation5 + $0xa8] sm:$0xff]   ;;  %v68_v22 = vadd.s32 16, %v1373_v13  ;;  %vm110_vm0 = vcmp.lt.s32.totalorder %v1373_v13, 1  ;;  %vm123_vm1 = vcmp.lt.s32.totalorder %v1373_v13, 7 }
  0x3d   :  { %1022 = vmatpush3.bf16.msra.mxu0 %v1150_v4  ;;  %v1162_v23 = vld [vmem:[#allocation5 + $0x28] sm:$0xff]   ;;  %v81_v24 = vand.u32 15, %v67_v17  ;;  %v1164_v25 = vld [vmem:[#allocation5 + $0x70] sm:$0xff]   ;;  %v95_v26 = vand.u32 15, %v69_v19  ;;  %v1167_v29 = vld [vmem:[#allocation5 + $0x78] sm:$0xff]   ;;  %vm1381_vm2 = vcmp.ne.s32.totalorder %v74_v20, 0 }
  0x3e   :  { %1023 = vmatprep.subr.bf16.mxu0 %v1152_v6  ;;  %v1165_v27 = vld [vmem:[#allocation5 + $0x30] sm:$0xff]   ;;  %v60_v31 = vld [vmem:[#allocation2] sm:$0xff]  ;;  %v61_v32 = vld [vmem:[#allocation2 + $0x8] sm:$0xff]  ;;  %v88_v36 = vand.u32 15, %v68_v22 }
  0x3f   :  { %1098 = vmatpush3.bf16.msra.mxu1 %v1151_v5  ;;  %v1166_v28 = vld [vmem:[#allocation5 + $0xb0] sm:$0xff]   ;;  %v63_v33 = vld [vmem:[#allocation2 + $0x18] sm:$0xff]  ;;  %vm1385_vm3 = vcmp.ne.s32.totalorder %v81_v24, 15  ;;  %vm1389_vm4 = vcmp.ne.s32.totalorder %v95_v26, 15  ;;  %v106_v38 = vrot.slane %v60_v31, 7  ;;  %v107_v39 = vrot.slane %v61_v32, 7  ;;  %vm1396_vm6 = vmpackc.low %vm1299_vm5, %vm1381_vm2 }
  0x40   :  { %1099 = vmatprep.subr.bf16.mxu1 %v1154_v9  ;;  %v1168_v37 = vld [vmem:[#allocation5 + $0x38] sm:$0xff]   ;;  %v119_v40 = vrot.slane %v60_v31, 1  ;;  %v120_v41 = vrot.slane %v61_v32, 1  ;;  %v62_v42 = vld [vmem:[#allocation2 + $0x10] sm:$0xff]  ;;  %v133_v44 = vpack.c.bf16 %v61_v32, %v60_v31  ;;  %v109_v45 = vrot.slane %v63_v33, 7  ;;  %vm1407_vm7 = vmpackc.low %vm1385_vm3, %vm1299_vm5 }
  0x41   :  { %1024 = vmatpush3.bf16.msra.mxu0 %v1153_v7  ;;  %v1169_v43 = vld [vmem:[#allocation5 + $0xb8] sm:$0xff]   ;;  %v121_v47 = vrot.slane %v62_v42, 1  ;;  %v113_v48 = vsel %vm110_vm0, %v106_v38, %v107_v39  ;;  %v122_v51 = vrot.slane %v63_v33, 1  ;;  %v108_v53 = vrot.slane %v62_v42, 7  ;;  %vm1418_vm8 = vmpackc.low %vm1389_vm4, %vm1299_vm5 }
  0x42   :  { %1025 = vmatprep.subr.bf16.mxu0 %v1155_v10  ;;  %v126_v49 = vsel %vm123_vm1, %v119_v40, %v120_v41  ;;  %362 = vmatprep.mubr.bf16.mxu0 %v133_v44  ;;  %v114_v52 = vsel %vm110_vm0, %v109_v45, %v106_v38  ;;  %vm1016_vm9 = vcmp.ne.s32.totalorder %v88_v36, 0  ;;  %v136_v60 = vpack.c.bf16 %v63_v33, %v62_v42 }
  0x43   :  { %1100 = vmatpush3.bf16.msra.mxu1 %v1154_v9  ;;  %v125_v54 = vsel %vm123_vm1, %v120_v41, %v121_v47  ;;  %v124_v57 = vsel %vm123_vm1, %v121_v47, %v122_v51  ;;  %v127_v58 = vsel %vm123_vm1, %v122_v51, %v119_v40  ;;  %v961_v59 = vpack.c.bf16 %v113_v48, %v114_v52  ;;  %vm1429_vm10 = vmpackc.low %vm1299_vm5, %vm1016_vm9 }
  0x44   :  { %1101 = vmatprep.subr.bf16.mxu1 %v1157_v12  ;;  %v969_v56 = vpack.c.bf16 %v125_v54, %v126_v49  ;;  %v973_v62 = vpack.c.bf16 %v127_v58, %v124_v57  ;;  %v111_v63 = vsel %vm110_vm0, %v108_v53, %v109_v45  ;;  %v112_v0 = vsel %vm110_vm0, %v107_v39, %v108_v53 }
  0x45   :  { %1026 = vmatpush3.bf16.msra.mxu0 %v1156_v11  ;;  %v965_v1 = vpack.c.bf16 %v111_v63, %v112_v0  ;;  %v1448_v39 = vsub.s32 0, %v1373_v13 }
  0x46   :  { %1027 = vmatprep.subr.bf16.mxu0 %v1158_v14  ;;  %1111 = vmatprep.mubr.msk.bf16.mxu1 %vm1407_vm7, %v969_v56 }
  0x47   :  { %1102 = vmatpush3.bf16.msra.mxu1 %v1157_v12 }
  0x48   :  { %1103 = vmatprep.subr.bf16.mxu1 %v1160_v15 }
  0x49   :  { %1028 = vmatpush3.bf16.msra.mxu0 %v1159_v16 }
  0x4a   :  { %1029 = vmatprep.subr.bf16.mxu0 %v1161_v18 }
  0x4b   :  { %1104 = vmatpush3.bf16.msra.mxu1 %v1160_v15 }
  0x4c   :  { %1105 = vmatprep.subr.bf16.mxu1 %v1163_v21 }
  0x4d   :  { %1030 = vmatpush3.bf16.msra.mxu0 %v1162_v23 }
  0x4e   :  { %1031 = vmatprep.subr.bf16.mxu0 %v1164_v25 }
  0x4f   :  { %1106 = vmatpush3.bf16.msra.mxu1 %v1163_v21 }
  0x50   :  { %1107 = vmatprep.subr.bf16.mxu1 %v1166_v28 }
  0x51   :  { %1032 = vmatpush3.bf16.msra.mxu0 %v1165_v27 }
  0x52   :  { %1033 = vmatprep.subr.bf16.mxu0 %v1167_v29 }
  0x53   :  { %1108 = vmatpush3.bf16.msra.mxu1 %v1166_v28 }
  0x54   :  { %1109 = vmatprep.subr.bf16.mxu1 %v1169_v43 }
  0x55   :  { %1034 = vmatpush3.bf16.msra.mxu0 %v1168_v37 }
  0x57   :  { %1110 = vmatpush3.bf16.msra.mxu1 %v1169_v43 }
  0x58   :  { %962 = vmatmul.mubr.msk.bf16.vlgmr.msra.gmra.mrb[0].mxu0 %vm1396_vm6, %v961_v59 }
  0x59   :  { %370 = vmatprep.mubr.bf16.mxu0 %v136_v60 }
  0x5a   :  { %1112 = vmatmul.mubr.msk.bf16.vlgmr.msra.gmra.mrb[0].mxu1 %vm1418_vm8, %v973_v62 }
  0x60   :  { %966 = vmatmul.mubr.msk.bf16.gmra.mrb[4].mxu0 %vm1429_vm10, %v965_v1 }
 0x12b   :  { %v1035_v2 = vpop.f32.mrb[0].mxu0 }
 0x12c   :  { %v1036_v3 = vpop.f32.mrb[1].mxu0 }
 0x12d   :  { %v1037_v4 = vadd.f32 %v1036_v3, %v1035_v2  ;;  %v1038_v5 = vpop.f32.mrb[2].mxu0  ;;  %v1113_v6 = vpop.f32.mrb[0].mxu1 }
 0x12e   :  { %v1039_v7 = vpop.f32.mrb[3].mxu0  ;;  %v413_v8 = vpop.f32.mrb[1].mxu1 }
 0x12f   :  { %v1040_v9 = vadd.f32 %v1039_v7, %v1038_v5  ;;  %v414_v10 = vadd.f32 %v1037_v4, %v413_v8  ;;  %v1114_v11 = vpop.f32.mrb[2].mxu1  ;;  %v1170_v4 = vld [vmem:[#allocation7 + $0x40] sm:$0xff]   ;;  %v1173_v7 = vld [vmem:[#allocation7 + $0x48] sm:$0xff]  }
 0x130   :  { %v416_v12 = vpop.f32.mrb[3].mxu1  ;;  %v1171_v5 = vld [vmem:[#allocation7] sm:$0xff]   ;;  %1057 = vmatprep.subr.bf16.mxu0 %v1170_v4  ;;  %v1174_v8 = vld [vmem:[#allocation7 + $0x8] sm:$0xff]  }
 0x131   :  { %v417_v14 = vadd.f32 %v1040_v9, %v416_v12  ;;  %1058 = vmatpush3.bf16.msra.mxu0 %v1171_v5  ;;  %v1175_v9 = vld [vmem:[#allocation7 + $0x88] sm:$0xff]   ;;  %v1178_v12 = vld [vmem:[#allocation7 + $0x90] sm:$0xff]  }
 0x132   :  { %1059 = vmatprep.subr.bf16.mxu0 %v1173_v7 }
 0x133   :  { %v1041_v15 = vpop.f32.mrb[4].mxu0  ;;  %v428_v20 = vadd.f32 %v417_v14, %v414_v10 }
 0x134   :  { %v1042_v16 = vpop.f32.mrb[5].mxu0 }
 0x135   :  { %v1043_v17 = vadd.f32 %v1042_v16, %v1041_v15  ;;  %v1044_v18 = vpop.f32.mrb[6].mxu0  ;;  %1060 = vmatpush3.bf16.msra.mxu0 %v1174_v8  ;;  %v1179_v15 = vld [vmem:[#allocation7 + $0x58] sm:$0xff]  }
 0x136   :  { %v1045_v19 = vpop.f32.mrb[7].mxu0 }
 0x137   :  { %v422_v21 = vadd.f32 %v1113_v6, %v1043_v17  ;;  %v1046_v22 = vadd.f32 %v1045_v19, %v1044_v18  ;;  %v1172_v6 = vld [vmem:[#allocation7 + $0x80] sm:$0xff]   ;;  %v1180_v17 = vld [vmem:[#allocation7 + $0x18] sm:$0xff]  }
 0x138   :  { %1115 = vmatprep.subr.bf16.mxu1 %v1172_v6  ;;  %v1181_v18 = vld [vmem:[#allocation7 + $0x98] sm:$0xff]   ;;  %v1182_v19 = vld [vmem:[#allocation7 + $0x60] sm:$0xff]  }
 0x139   :  { %v429_v23 = vadd.f32 %v428_v20, %v422_v21  ;;  %v425_v24 = vadd.f32 %v1114_v11, %v1046_v22  ;;  %1116 = vmatpush3.bf16.msra.mxu1 %v1172_v6  ;;  %v1177_v11 = vld [vmem:[#allocation7 + $0x10] sm:$0xff]   ;;  %v1183_v20 = vld [vmem:[#allocation7 + $0x20] sm:$0xff]   ;;  %v1185_v22 = vld [vmem:[#allocation7 + $0x68] sm:$0xff]  }
 0x13a   :  { %1117 = vmatprep.subr.bf16.mxu1 %v1175_v9 }
 0x13b   :  { %v430_v25 = vadd.f32 %v429_v23, %v425_v24  ;;  %v1186_v23 = vld [vmem:[#allocation7 + $0x28] sm:$0xff]  }
 0x13d   :  { %v431_v26 = vrot.slane %v430_v25, 4  ;;  %1118 = vmatpush3.bf16.msra.mxu1 %v1175_v9 }
 0x13e   :  { %1119 = vmatprep.subr.bf16.mxu1 %v1178_v12 }
 0x13f   :  { %v432_v27 = vadd.f32 %v431_v26, %v430_v25  ;;  %v1188_v25 = vld [vmem:[#allocation7 + $0x70] sm:$0xff]  }
 0x140   :  { %v1189_v26 = vld [vmem:[#allocation7 + $0x30] sm:$0xff]  }
 0x141   :  { %v433_v28 = vrot.slane %v432_v27, 2  ;;  %1120 = vmatpush3.bf16.msra.mxu1 %v1178_v12 }
 0x142   :  { %1121 = vmatprep.subr.bf16.mxu1 %v1181_v18 }
 0x143   :  { %v434_v29 = vadd.f32 %v433_v28, %v432_v27  ;;  %v1190_v27 = vld [vmem:[#allocation7 + $0xb0] sm:$0xff]   ;;  %v1191_v28 = vld [vmem:[#allocation7 + $0x78] sm:$0xff]  }
 0x145   :  { %v435_v30 = vrot.slane %v434_v29, 1  ;;  %1122 = vmatpush3.bf16.msra.mxu1 %v1181_v18 }
 0x147   :  { %v436_v31 = vadd.f32 %v435_v30, %v434_v29  ;;  %v1192_v29 = vld [vmem:[#allocation7 + $0x38] sm:$0xff]  }
 0x148   :  { %v1193_v30 = vld [vmem:[#allocation7 + $0xb8] sm:$0xff]  }
 0x149   :  { %437 = vrot.lane.b32.xlu0 %v436_v31, %s1297_s13 }
 0x1bb   :  { %v438_v32 = vpop.permute.xlu0 %437 }
 0x1bc   :  { %v439_v33 = vadd.f32 %v438_v32, %v436_v31 }
 0x1be   :  { %440 = vrot.lane.b32.xlu0 %v439_v33, %s1300_s2 }
 0x230   :  { %v441_v34 = vpop.permute.xlu0 %440 }
 0x231   :  { %v442_v35 = vadd.f32 %v441_v34, %v439_v33 }
 0x233   :  { %443 = vrot.lane.b32.xlu1 %v442_v35, %s1301_s26 }
 0x2a5   :  { %v444_v36 = vpop.permute.xlu1 %443 }
 0x2a6   :  { %v445_v37 = vadd.f32 %v444_v36, %v442_v35  ;;  %v1474_v35 = vld [vmem:[%s1563_s3] sm:$0xf]  ;;  %v497_v36 = vsub.s32 1, %v1373_v13  ;;  %s1302_s3 = smov [#allocation8]  }
 0x2a8   :  { %446 = vrot.lane.b32.xlu1 %v445_v37, %s1293_s25 }
 0x31a   :  { %v447_v38 = vpop.permute.xlu1 %446 }
 0x31b   :  { %v448_v40 = vadd.f32 %v447_v38, %v445_v37 }
 0x31d   :  { %v449_v41 = vmul.f32 0.001953125, %v448_v40 }
 0x31f   :  { %v453_v42 = vrot.slane %v449_v41, %v1448_v39  ;;  %v498_v41 = vrot.slane %v1474_v35, %v497_v36 }
 0x321   :  { %v1451_v43 = vsub.f32 %v414_v10, %v453_v42  ;;  %v1453_v44 = vsub.f32 %v417_v14, %v453_v42  ;;  %v1455_v45 = vsub.f32 %v422_v21, %v453_v42  ;;  %v1457_v47 = vsub.f32 %v425_v24, %v453_v42  ;;  %v1176_v10 = vld [vmem:[#allocation7 + $0x50] sm:$0xff]   ;;  %v1184_v21 = vld [vmem:[#allocation7 + $0xa0] sm:$0xff]   ;;  %v1187_v24 = vld [vmem:[#allocation7 + $0xa8] sm:$0xff]  }
 0x322   :  { %1061 = vmatprep.subr.bf16.mxu0 %v1176_v10  ;;  %1123 = vmatprep.subr.bf16.mxu1 %v1184_v21 }
 0x323   :  { %v458_v48 = vmul.f32 %v1451_v43, %v1451_v43  ;;  %v459_v49 = vmul.f32 %v1453_v44, %v1453_v44  ;;  %v460_v51 = vmul.f32 %v1455_v45, %v1455_v45  ;;  %v461_v53 = vmul.f32 %v1457_v47, %v1457_v47  ;;  %1062 = vmatpush3.bf16.msra.mxu0 %v1177_v11 }
 0x324   :  { %1063 = vmatprep.subr.bf16.mxu0 %v1179_v15  ;;  %1124 = vmatpush3.bf16.msra.mxu1 %v1184_v21 }
 0x325   :  { %v462_v52 = vadd.f32 %v459_v49, %v458_v48  ;;  %1125 = vmatprep.subr.bf16.mxu1 %v1187_v24 }
 0x327   :  { %v463_v54 = vadd.f32 %v462_v52, %v460_v51  ;;  %1064 = vmatpush3.bf16.msra.mxu0 %v1180_v17 }
 0x328   :  { %1065 = vmatprep.subr.bf16.mxu0 %v1182_v19  ;;  %1126 = vmatpush3.bf16.msra.mxu1 %v1187_v24 }
 0x329   :  { %v464_v56 = vadd.f32 %v463_v54, %v461_v53  ;;  %1127 = vmatprep.subr.bf16.mxu1 %v1190_v27 }
 0x32b   :  { %v465_v57 = vrot.slane %v464_v56, 4  ;;  %1066 = vmatpush3.bf16.msra.mxu0 %v1183_v20 }
 0x32c   :  { %1067 = vmatprep.subr.bf16.mxu0 %v1185_v22  ;;  %1128 = vmatpush3.bf16.msra.mxu1 %v1190_v27 }
 0x32d   :  { %v466_v58 = vadd.f32 %v465_v57, %v464_v56  ;;  %1129 = vmatprep.subr.bf16.mxu1 %v1193_v30 }
 0x32f   :  { %v467_v59 = vrot.slane %v466_v58, 2  ;;  %1068 = vmatpush3.bf16.msra.mxu0 %v1186_v23 }
 0x330   :  { %1069 = vmatprep.subr.bf16.mxu0 %v1188_v25  ;;  %1130 = vmatpush3.bf16.msra.mxu1 %v1193_v30 }
 0x331   :  { %v468_v60 = vadd.f32 %v467_v59, %v466_v58 }
 0x333   :  { %v469_v62 = vrot.slane %v468_v60, 1  ;;  %1070 = vmatpush3.bf16.msra.mxu0 %v1189_v26 }
 0x334   :  { %1071 = vmatprep.subr.bf16.mxu0 %v1191_v28 }
 0x335   :  { %v470_v63 = vadd.f32 %v469_v62, %v468_v60 }
 0x337   :  { %471 = vrot.lane.b32.xlu0 %v470_v63, %s1297_s13  ;;  %1072 = vmatpush3.bf16.msra.mxu0 %v1192_v29 }
 0x3a9   :  { %v472_v0 = vpop.permute.xlu0 %471 }
 0x3aa   :  { %v473_v1 = vadd.f32 %v472_v0, %v470_v63 }
 0x3ac   :  { %474 = vrot.lane.b32.xlu1 %v473_v1, %s1300_s2 }
 0x41e   :  { %v475_v2 = vpop.permute.xlu1 %474 }
 0x41f   :  { %v476_v3 = vadd.f32 %v475_v2, %v473_v1 }
 0x421   :  { %477 = vrot.lane.b32.xlu0 %v476_v3, %s1301_s26 }
 0x493   :  { %v478_v14 = vpop.permute.xlu0 %477 }
 0x494   :  { %v479_v16 = vadd.f32 %v478_v14, %v476_v3 }
 0x496   :  { %480 = vrot.lane.b32.xlu1 %v479_v16, %s1293_s25 }
 0x508   :  { %v481_v31 = vpop.permute.xlu1 %480 }
 0x509   :  { %v482_v32 = vadd.f32 %v481_v31, %v479_v16 }
 0x50b   :  { %v483_v33 = vmul.f32 0.001953125, %v482_v32 }
 0x50d   :  { %v484_v34 = vadd.f32 1e-05, %v483_v33 }
 0x50f   :  { %1194 = vrsqrt.f32 %v484_v34 }
 0x519   :  { %v1195_v37 = vpop.eup %1194 }
 0x51a   :  { %v486_v38 = vmul.f32 %v1195_v37, %v1474_v35 }
 0x51c   :  { %v490_v40 = vrot.slane %v486_v38, %v1448_v39 }
 0x51e   :  { %v493_v42 = vmul.f32 %v490_v40, %v1455_v45  ;;  %v494_v48 = vmul.f32 %v490_v40, %v1457_v47  ;;  %v491_v49 = vmul.f32 %v490_v40, %v1451_v43  ;;  %v492_v51 = vmul.f32 %v490_v40, %v1453_v44 }
 0x520   :  { %v499_v52 = vadd.f32 %v498_v41, %v491_v49  ;;  %v500_v53 = vadd.f32 %v498_v41, %v492_v51  ;;  %v502_v54 = vadd.f32 %v498_v41, %v494_v48  ;;  %v501_v56 = vadd.f32 %v498_v41, %v493_v42 }
 0x522   :  { %v1484_v57 = vmax.f32 %v499_v52, 0.0  ;;  %v1486_v58 = vmax.f32 %v500_v53, 0.0  ;;  %v1488_v59 = vmax.f32 %v502_v54, 0.0  ;;  %v1490_v60 = vmax.f32 %v501_v56, 0.0 }
 0x524   :  { %v507_v45 = vrot.slane %v1484_v57, 7  ;;  %v508_v47 = vrot.slane %v1486_v58, 7  ;;  %v532_v43 = vpack.c.bf16 %v1486_v58, %v1484_v57  ;;  %v510_v44 = vrot.slane %v1488_v59, 7 }
 0x525   :  { %v519_v62 = vrot.slane %v1484_v57, 1  ;;  %v520_v63 = vrot.slane %v1486_v58, 1  ;;  %v521_v0 = vrot.slane %v1490_v60, 1  ;;  %v522_v3 = vrot.slane %v1488_v59, 1 }
 0x526   :  { %761 = vmatprep.mubr.bf16.mxu0 %v532_v43  ;;  %v513_v1 = vsel %vm110_vm0, %v507_v45, %v508_v47  ;;  %v514_v2 = vsel %vm110_vm0, %v510_v44, %v507_v45  ;;  %v535_v7 = vpack.c.bf16 %v1488_v59, %v1490_v60  ;;  %v509_v11 = vrot.slane %v1490_v60, 7 }
 0x527   :  { %v1001_v4 = vpack.c.bf16 %v513_v1, %v514_v2  ;;  %v524_v5 = vsel %vm123_vm1, %v520_v63, %v521_v0  ;;  %v525_v6 = vsel %vm123_vm1, %v519_v62, %v520_v63  ;;  %v523_v9 = vsel %vm123_vm1, %v521_v0, %v522_v3 }
 0x528   :  { %v1009_v8 = vpack.c.bf16 %v524_v5, %v525_v6  ;;  %v526_v10 = vsel %vm123_vm1, %v522_v3, %v519_v62  ;;  %v511_v14 = vsel %vm110_vm0, %v509_v11, %v510_v44  ;;  %v512_v15 = vsel %vm110_vm0, %v508_v47, %v509_v11 }
 0x529   :  { %1002 = vmatmul.mubr.msk.bf16.vlgmr.msra.gmra.mrb[8].mxu0 %vm1396_vm6, %v1001_v4  ;;  %v1013_v12 = vpack.c.bf16 %v526_v10, %v523_v9  ;;  %v1005_v16 = vpack.c.bf16 %v511_v14, %v512_v15 }
 0x52a   :  { %1131 = vmatprep.mubr.msk.bf16.mxu1 %vm1407_vm7, %v1009_v8  ;;  %769 = vmatprep.mubr.bf16.mxu0 %v535_v7 }
 0x52b   :  { %1132 = vmatmul.mubr.msk.bf16.vlgmr.msra.gmra.mrb[4].mxu1 %vm1418_vm8, %v1013_v12 }
 0x531   :  { %1006 = vmatmul.mubr.msk.bf16.gmra.mrb[12].mxu0 %vm1429_vm10, %v1005_v16 }
 0x5fc   :  { %v1073_v46 = vpop.f32.mrb[8].mxu0 }
 0x5fd   :  { %v1074_v17 = vpop.f32.mrb[9].mxu0 }
 0x5fe   :  { %v1075_v18 = vadd.f32 %v1074_v17, %v1073_v46  ;;  %v1133_v19 = vpop.f32.mrb[4].mxu1  ;;  %v1076_v50 = vpop.f32.mrb[10].mxu0 }
 0x5ff   :  { %v812_v20 = vpop.f32.mrb[5].mxu1  ;;  %v1077_v21 = vpop.f32.mrb[11].mxu0 }
 0x600   :  { %v813_v22 = vadd.f32 %v1075_v18, %v812_v20  ;;  %v1078_v55 = vadd.f32 %v1077_v21, %v1076_v50  ;;  %v1134_v23 = vpop.f32.mrb[6].mxu1 }
 0x601   :  { %v815_v24 = vpop.f32.mrb[7].mxu1 }
 0x602   :  { %v816_v25 = vadd.f32 %v1078_v55, %v815_v24  ;;  %v899_v24 = vsub.s32 3, %v1373_v13 }
 0x604   :  { %v1079_v26 = vpop.f32.mrb[12].mxu0  ;;  %v827_v31 = vadd.f32 %v816_v25, %v813_v22 }
 0x605   :  { %v1080_v27 = vpop.f32.mrb[13].mxu0 }
 0x606   :  { %v1081_v28 = vadd.f32 %v1080_v27, %v1079_v26  ;;  %v1082_v29 = vpop.f32.mrb[14].mxu0 }
 0x607   :  { %v1083_v30 = vpop.f32.mrb[15].mxu0 }
 0x608   :  { %v821_v61 = vadd.f32 %v1133_v19, %v1081_v28  ;;  %v1084_v32 = vadd.f32 %v1083_v30, %v1082_v29  ;;  %v900_v28 = vrot.slane %v1474_v35, %v899_v24 }
 0x60a   :  { %v828_v33 = vadd.f32 %v827_v31, %v821_v61  ;;  %v824_v34 = vadd.f32 %v1134_v23, %v1084_v32  ;;  %v886_v23 = vrot.slane %v1474_v35, 2 }
 0x60c   :  { %v829_v36 = vadd.f32 %v828_v33, %v824_v34 }
 0x60e   :  { %v830_v37 = vrot.slane %v829_v36, 4 }
 0x610   :  { %v831_v38 = vadd.f32 %v830_v37, %v829_v36 }
 0x612   :  { %v832_v40 = vrot.slane %v831_v38, 2 }
 0x614   :  { %v833_v41 = vadd.f32 %v832_v40, %v831_v38 }
 0x616   :  { %v834_v42 = vrot.slane %v833_v41, 1 }
 0x618   :  { %v835_v48 = vadd.f32 %v834_v42, %v833_v41 }
 0x61a   :  { %836 = vrot.lane.b32.xlu0 %v835_v48, %s1297_s13 }
 0x68c   :  { %v837_v49 = vpop.permute.xlu0 %836 }
 0x68d   :  { %v838_v51 = vadd.f32 %v837_v49, %v835_v48 }
 0x68f   :  { %839 = vrot.lane.b32.xlu1 %v838_v51, %s1300_s2 }
 0x701   :  { %v840_v52 = vpop.permute.xlu1 %839 }
 0x702   :  { %v841_v53 = vadd.f32 %v840_v52, %v838_v51 }
 0x704   :  { %842 = vrot.lane.b32.xlu0 %v841_v53, %s1301_s26 }
 0x776   :  { %v843_v54 = vpop.permute.xlu0 %842 }
 0x777   :  { %v844_v56 = vadd.f32 %v843_v54, %v841_v53 }
 0x779   :  { %845 = vrot.lane.b32.xlu1 %v844_v56, %s1293_s25 }
 0x7eb   :  { %v846_v45 = vpop.permute.xlu1 %845 }
 0x7ec   :  { %v847_v47 = vadd.f32 %v846_v45, %v844_v56 }
 0x7ee   :  { %v848_v43 = vmul.f32 0.001953125, %v847_v47 }
 0x7f0   :  { %v852_v44 = vrot.slane %v848_v43, %v1448_v39 }
 0x7f2   :  { %v853_v62 = vsub.f32 %v813_v22, %v852_v44  ;;  %v854_v63 = vsub.f32 %v816_v25, %v852_v44  ;;  %v855_v0 = vsub.f32 %v821_v61, %v852_v44  ;;  %v856_v1 = vsub.f32 %v824_v34, %v852_v44 }
 0x7f4   :  { %v857_v2 = vmul.f32 %v853_v62, %v853_v62  ;;  %v858_v3 = vmul.f32 %v854_v63, %v854_v63  ;;  %v859_v4 = vmul.f32 %v855_v0, %v855_v0  ;;  %v860_v6 = vmul.f32 %v856_v1, %v856_v1 }
 0x7f6   :  { %v861_v5 = vadd.f32 %v858_v3, %v857_v2 }
 0x7f8   :  { %v862_v7 = vadd.f32 %v861_v5, %v859_v4 }
 0x7fa   :  { %v863_v8 = vadd.f32 %v862_v7, %v860_v6 }
 0x7fc   :  { %v864_v9 = vrot.slane %v863_v8, 4 }
 0x7fe   :  { %v865_v10 = vadd.f32 %v864_v9, %v863_v8 }
 0x800   :  { %v866_v11 = vrot.slane %v865_v10, 2 }
 0x802   :  { %v867_v12 = vadd.f32 %v866_v11, %v865_v10 }
 0x804   :  { %v868_v14 = vrot.slane %v867_v12, 1 }
 0x806   :  { %v869_v15 = vadd.f32 %v868_v14, %v867_v12 }
 0x808   :  { %870 = vrot.lane.b32.xlu0 %v869_v15, %s1297_s13 }
 0x87a   :  { %v871_v16 = vpop.permute.xlu0 %870 }
 0x87b   :  { %v872_v46 = vadd.f32 %v871_v16, %v869_v15 }
 0x87d   :  { %873 = vrot.lane.b32.xlu1 %v872_v46, %s1300_s2 }
 0x8ef   :  { %v874_v17 = vpop.permute.xlu1 %873 }
 0x8f0   :  { %v875_v18 = vadd.f32 %v874_v17, %v872_v46 }
 0x8f2   :  { %876 = vrot.lane.b32.xlu0 %v875_v18, %s1301_s26 }
 0x964   :  { %v877_v19 = vpop.permute.xlu0 %876 }
 0x965   :  { %v878_v50 = vadd.f32 %v877_v19, %v875_v18 }
 0x967   :  { %879 = vrot.lane.b32.xlu1 %v878_v50, %s1293_s25  ;;  %s922_s25 = sshll.u32 %s1302_s3, 4  ;;  %s923_s25 = int_to_ptr.vmem [resolvable:$true] %s922_s25 }
 0x968   :  { %s1264_s5 = scalar_lea.vmem %s923_s25, 512  ;;  %p1269_p11 = scmp.lt.s32.totalorder %s923_s25, %s923_s25 }
 0x969   :  { %p1265_p10 = scmp.ne.s32.totalorder %s923_s25, %s1264_s5  ;;  %p1270_p12 = scmp.lt.s32.totalorder %s1264_s5, %s1264_s5 }
 0x96b   :  { %p1271_p13 = por %p1270_p12, %p1269_p11 }
 0x96d   :  { %p1272_p0 = pnand %p1271_p13, %p1265_p10 }
 0x9d9   :  { %v880_v20 = vpop.permute.xlu1 %879 }
 0x9da   :  { %v881_v21 = vadd.f32 %v880_v20, %v878_v50 }
 0x9dc   :  { %v882_v22 = vmul.f32 0.001953125, %v881_v21 }
 0x9de   :  { %v883_v55 = vadd.f32 1e-05, %v882_v22 }
 0x9e0   :  { %1196 = vrsqrt.f32 %v883_v55 }
 0x9ea   :  { %v1197_v25 = vpop.eup %1196 }
 0x9eb   :  { %v888_v26 = vmul.f32 %v1197_v25, %v886_v23 }
 0x9ed   :  { %v892_v27 = vrot.slane %v888_v26, %v1448_v39 }
 0x9ef   :  { %v893_v29 = vmul.f32 %v892_v27, %v853_v62  ;;  %v894_v30 = vmul.f32 %v892_v27, %v854_v63  ;;  %v895_v31 = vmul.f32 %v892_v27, %v855_v0  ;;  %v896_v61 = vmul.f32 %v892_v27, %v856_v1 }
 0x9f1   :  { %v901_v32 = vadd.f32 %v900_v28, %v893_v29  ;;  %v902_v33 = vadd.f32 %v900_v28, %v894_v30  ;;  %v903_v34 = vadd.f32 %v900_v28, %v895_v31  ;;  %v904_v36 = vadd.f32 %v900_v28, %v896_v61 }
 0x9f3   :  { %v905_v37 = vadd.f32 %v901_v32, %v1484_v57  ;;  %v906_v13 = vadd.f32 %v902_v33, %v1486_v58  ;;  %v907_v38 = vadd.f32 %v903_v34, %v1490_v60  ;;  %v908_v39 = vadd.f32 %v904_v36, %v1488_v59 }
 0x9f5   :  { %v909_v40 = vmax.f32 %v905_v37, 0.0  ;;  %v910_v35 = vmax.f32 %v906_v13, 0.0  ;;  %v911_v41 = vmax.f32 %v907_v38, 0.0  ;;  %v912_v42 = vmax.f32 %v908_v39, 0.0 }
 0x9f7   :  { %913 = vst [vmem:[#allocation8] sm:$0xff] %v909_v40  ;;  %914 = vst [vmem:[#allocation8 + $0x8] sm:$0xff] %v910_v35 }
 0x9f8   :  { %915 = vst [vmem:[#allocation8 + $0x10] sm:$0xff] %v911_v41  ;;  %916 = vst [vmem:[#allocation8 + $0x18] sm:$0xff] %v912_v42 }
 0x9f9   :  { %1275 = shalt.err (!%p1272_p0)
}
 0x9fa   :  { %s1276_s8 = scalar_lea.hbm %s1564_s4, 512 }
 0x9fb   :  { %p1277_p1 = scmp.ne.s32.totalorder %s1564_s4, %s1276_s8  ;;  %p1280_p2 = scmp.lt.u32.totalorder %s1276_s8, %s1564_s4 }
 0x9fd   :  { %p1282_p3 = pnand %p1280_p2, %p1277_p1 }
 0x9ff   :  { %1285 = shalt.err (!%p1282_p3)
}
 0xa00   :  { %928 = dma.vmem_to_hbm [thread:$0]  %s923_s25, 512, %s1564_s4, [#allocation4], %s1296_s1, %s1296_s1, %s1297_s13  }
 0xa01   :  { %1290 = dma.done.wait [#allocation4], 512  }
 0xa02   :  { %1291 = vsyncadd [#allocation4], 4294966784 }
 0xa03   :  { %932 = vsyncpa [#allocation3], 1 }
 0xa04   :  { %933 = vsyncpa [#allocation6], 1 }
 0xa05   :  { %934 = vsyncpa [#allocation4], 1 }

</bundles_post_ra>
